<compile_context>
chip_gen: v7x
topology: tpu7x:2x2x1
jax: 0.10.0
libtpu: 0.0.40
codegen_flags: <defaults>
</compile_context>

<pallas_src>
import functools

import jax
import jax.numpy as jnp
from jax.experimental import pallas as pl
from jax.experimental.pallas import tpu as pltpu


# ---------------------------------------------------------------------------
# Config (synthetic, deterministic) -- mirrors the PyTorch module's __init__
# ---------------------------------------------------------------------------
CONFIG = dict(
    model_architecture="DeltaRN",
    hidden_dim=32,                      # K; in_size = 2 * hidden_dim = 64
    g_layers=[64, 64],
    question_injection_position=0,
    f_fc1=64,
    f_fc2=64,
    num_output_classes=8,
    rl_dropout=0.0,                     # dropout is identity (p=0 / eval mode)
    max_question_tokens_per_scene=8,    # unused in forward
)


# ---------------------------------------------------------------------------
# Fused Pallas kernel: g-MLP over all pairs + pair-sum + f-MLP + log_softmax
# ---------------------------------------------------------------------------
def _rn_fused_kernel(*refs, B, D, inject_pos, n_g):
    """refs = (x2d, qst, <g-layer weights...>, f1w, f1b, f2w, f2b, f3w, f3b, out)

    g-layer weight order:
      layer 0:   W0_a (K,G0), W0_b (K,G0), b0 (1,G0) [, W0_q (H,G0) if inject==0]
      layer i>0: Wi (prev,Gi), bi (1,Gi)             [, Wi_q (H,Gi) if inject==i]
    """
    o_ref = refs[-1]
    x = refs[0][...]            # (B*D, K)   object features, batch folded into rows
    q = refs[1][...]            # (B, H)     question embedding
    cur = 2

    # ---------------- g layer 0 (decomposed pairwise layer) -----------------
    w0a = refs[cur][...]        # (K, G0)  multiplies x[b, j]  (x_i part: varies with j)
    w0b = refs[cur + 1][...]    # (K, G0)  multiplies x[b, i]  (x_j part: varies with i)
    b0 = refs[cur + 2][...]     # (1, G0)
    cur += 3
    G0 = w0a.shape[-1]

    A = jnp.dot(x, w0a, preferred_element_type=jnp.float32)    # (B*D, G0), indexed by j
    C = jnp.dot(x, w0b, preferred_element_type=jnp.float32)    # (B*D, G0), indexed by i

    bias0 = jnp.broadcast_to(b0, (B, G0))                      # (B, G0)
    if inject_pos == 0:
        w0q = refs[cur][...]    # (H, G0)  question rows of the layer-0 weight
        cur += 1
        bias0 = bias0 + jnp.dot(q, w0q, preferred_element_type=jnp.float32)

    # Fold (b0 + qst @ W0_q) into the j-indexed term, then broadcast-add the pairs:
    #   pre[b, i, j, :] = (A[b, j, :] + bias0[b, :]) + C[b, i, :]
    A3 = A.reshape(B, D, G0) + jnp.broadcast_to(bias0.reshape(B, 1, G0), (B, D, G0))
    pre = (jnp.broadcast_to(A3.reshape(B, 1, D, G0), (B, D, D, G0)) +
           jnp.broadcast_to(C.reshape(B, D, 1, G0), (B, D, D, G0)))
    h = jnp.maximum(pre, 0.0).reshape(B * D * D, G0)           # (B*D*D, G0) = (128, G0)

    # ---------------- remaining g layers on the folded slab -----------------
    for idx in range(1, n_g):
        w = refs[cur][...]
        b = refs[cur + 1][...]
        cur += 2
        gi = w.shape[-1]
        z = jnp.dot(h, w, preferred_element_type=jnp.float32) + b
        if idx == inject_pos:   # question injection folded as a per-batch bias
            wq = refs[cur][...]
            cur += 1
            qb = jnp.dot(q, wq, preferred_element_type=jnp.float32)      # (B, gi)
            z = (z.reshape(B, D * D, gi) +
                 jnp.broadcast_to(qb.reshape(B, 1, gi), (B, D * D, gi))
                 ).reshape(B * D * D, gi)
        h = jnp.maximum(z, 0.0)

    # ---------------- sum over all D*D object pairs per batch ---------------
    g_last = h.shape[-1]
    x_g = jnp.sum(h.reshape(B, D * D, g_last), axis=1)         # (B, g_last)

    # ---------------- f MLP + log_softmax -----------------------------------
    f1w, f1b = refs[cur][...], refs[cur + 1][...]
    f2w, f2b = refs[cur + 2][...], refs[cur + 3][...]
    f3w, f3b = refs[cur + 4][...], refs[cur + 5][...]
    assert cur + 6 == len(refs) - 1, "weight/bias ref bookkeeping mismatch"

    h = jnp.maximum(jnp.dot(x_g, f1w, preferred_element_type=jnp.float32) + f1b, 0.0)
    h = jnp.dot(h, f2w, preferred_element_type=jnp.float32) + f2b
    # TODO(synk): nn.Dropout(p=rl_dropout) skipped (identity at p=0 / eval mode).
    h = jnp.maximum(h, 0.0)
    logits = jnp.dot(h, f3w, preferred_element_type=jnp.float32) + f3b

    m = jnp.max(logits, axis=-1, keepdims=True)
    z = logits - m
    o_ref[...] = z - jnp.log(jnp.sum(jnp.exp(z), axis=-1, keepdims=True))


# ---------------------------------------------------------------------------
# Wrapper
# ---------------------------------------------------------------------------
def relational_layer_forward(x, qst, params, inject_pos):
    B, D, K = x.shape
    H = qst.shape[-1]
    g_ws, g_bs = params["g_w"], params["g_b"]
    n_g = len(g_ws)
    n_cls = params["f3_w"].shape[-1]

    x2d = x.reshape(B * D, K)   # fold batch into rows (cheap leading-dim reshape)

    # Split the first g layer's weight according to the PyTorch concat order:
    # features are [x_i (= x[b, j]) (K), x_j (= x[b, i]) (K), qst (H) if inject==0].
    w0 = g_ws[0]
    args = [x2d, qst, w0[:K, :], w0[K:2 * K, :], g_bs[0]]
    if inject_pos == 0:
        args.append(w0[2 * K:, :])          # question rows of W0
    for idx in range(1, n_g):
        w, b = g_ws[idx], g_bs[idx]
        if idx == inject_pos:
            prev = g_ws[idx - 1].shape[-1]
            args += [w[:prev, :], b, w[prev:, :]]   # [h rows, bias, question rows]
        else:
            args += [w, b]
    args += [params["f1_w"], params["f1_b"],
             params["f2_w"], params["f2_b"],
             params["f3_w"], params["f3_b"]]

    # Everything is tiny -> single grid point, full-array VMEM blocks, no pipelining.
    in_specs = [pl.BlockSpec(a.shape, lambda i: (0, 0)) for a in args]

    kern = functools.partial(_rn_fused_kernel, B=B, D=D,
                             inject_pos=inject_pos, n_g=n_g)
    return pl.pallas_call(
        kern,
        out_shape=jax.ShapeDtypeStruct((B, n_cls), jnp.float32),
        grid=(1,),
        in_specs=in_specs,
        out_specs=pl.BlockSpec((B, n_cls), lambda i: (0, 0)),
        compiler_params=pltpu.CompilerParams(
            dimension_semantics=("arbitrary",)),
    )(*args)


# ---------------------------------------------------------------------------
# Pure-JAX reference (mirrors the PyTorch forward exactly, for a sanity check)
# ---------------------------------------------------------------------------
def reference_forward(x, qst, params, inject_pos):
    B, D, K = x.shape
    x_i = jnp.broadcast_to(x[:, None, :, :], (B, D, D, K))   # varies with j
    x_j = jnp.broadcast_to(x[:, :, None, :], (B, D, D, K))   # varies with i
    h = jnp.concatenate([x_i, x_j], axis=-1).reshape(B * D * D, 2 * K)
    q = jnp.broadcast_to(qst[:, None, :], (B, D * D, qst.shape[-1]))
    q = q.reshape(B * D * D, -1)
    for idx, (w, b) in enumerate(zip(params["g_w"], params["g_b"])):
        if idx == inject_pos:
            h = jnp.concatenate([h, q], axis=-1)
        h = jnp.maximum(h @ w + b, 0.0)
    x_g = h.reshape(B, D * D, -1).sum(axis=1)
    h = jnp.maximum(x_g @ params["f1_w"] + params["f1_b"], 0.0)
    h = jnp.maximum(h @ params["f2_w"] + params["f2_b"], 0.0)
    logits = h @ params["f3_w"] + params["f3_b"]
    return jax.nn.log_softmax(logits, axis=1)


# ---------------------------------------------------------------------------
# Deterministic parameter init (weights stored pre-transposed as (in, out))
# ---------------------------------------------------------------------------
def init_params(cfg):
    key = jax.random.PRNGKey(0)
    hidden = cfg["hidden_dim"]
    in_size = 2 * hidden
    g_sizes = cfg["g_layers"]
    inject = cfg["question_injection_position"]

    def linear(key, fan_in, fan_out):
        kw, kb = jax.random.split(key)
        s = 1.0 / jnp.sqrt(fan_in)
        w = jax.random.uniform(kw, (fan_in, fan_out), jnp.float32, -s, s)
        b = jax.random.uniform(kb, (1, fan_out), jnp.float32, -s, s)
        return w, b

    params = {"g_w": [], "g_b": []}
    for idx, out_s in enumerate(g_sizes):
        in_s = in_size if idx == 0 else g_sizes[idx - 1]
        if idx == inject:
            in_s = in_s + hidden
        key, sub = jax.random.split(key)
        w, b = linear(sub, in_s, out_s)
        params["g_w"].append(w)
        params["g_b"].append(b)

    key, k1 = jax.random.split(key)
    params["f1_w"], params["f1_b"] = linear(k1, g_sizes[-1], cfg["f_fc1"])
    key, k2 = jax.random.split(key)
    params["f2_w"], params["f2_b"] = linear(k2, cfg["f_fc1"], cfg["f_fc2"])
    key, k3 = jax.random.split(key)
    params["f3_w"], params["f3_b"] = linear(k3, cfg["f_fc2"], cfg["num_output_classes"])
    return params


# ---------------------------------------------------------------------------
if __name__ == "__main__":
    cfg = CONFIG
    B, D, K = 2, 8, cfg["hidden_dim"]        # x: (batch, objects, hidden_dim)

    key = jax.random.PRNGKey(0)
    kx, kq = jax.random.split(key)
    x = jax.random.normal(kx, (B, D, K), jnp.float32)
    qst = jax.random.normal(kq, (B, cfg["hidden_dim"]), jnp.float32)

    params = init_params(cfg)
    inject = cfg["question_injection_position"]

    out = relational_layer_forward(x, qst, params, inject)
    out = jax.block_until_ready(out)

    ref = reference_forward(x, qst, params, inject)
    assert out.shape == (B, cfg["num_output_classes"])
    assert jnp.allclose(out, ref, atol=1e-3, rtol=1e-3), "mismatch vs reference"

    print("KERNEL_OK")
</pallas_src>

<mosaic_0001>
module attributes {stable_mosaic.version = 11 : i64} {
  func.func @_rn_fused_kernel(%arg0: i32, %arg1: memref<16x32xf32, #tpu.memory_space<vmem>>, %arg2: memref<2x32xf32, #tpu.memory_space<vmem>>, %arg3: memref<32x64xf32, #tpu.memory_space<vmem>>, %arg4: memref<32x64xf32, #tpu.memory_space<vmem>>, %arg5: memref<1x64xf32, #tpu.memory_space<vmem>>, %arg6: memref<32x64xf32, #tpu.memory_space<vmem>>, %arg7: memref<64x64xf32, #tpu.memory_space<vmem>>, %arg8: memref<1x64xf32, #tpu.memory_space<vmem>>, %arg9: memref<64x64xf32, #tpu.memory_space<vmem>>, %arg10: memref<1x64xf32, #tpu.memory_space<vmem>>, %arg11: memref<64x64xf32, #tpu.memory_space<vmem>>, %arg12: memref<1x64xf32, #tpu.memory_space<vmem>>, %arg13: memref<64x8xf32, #tpu.memory_space<vmem>>, %arg14: memref<1x8xf32, #tpu.memory_space<vmem>>, %arg15: memref<2x8xf32, #tpu.memory_space<vmem>>) attributes {dimension_semantics = [#tpu.dimension_semantics<arbitrary>], iteration_bounds = array<i64: 1>, scalar_prefetch = 0 : i64, scratch_operands = 0 : i64, tpu.core_type = #tpu.core_type<tc>, window_params = [{pipeline_mode = #tpu.pipeline_mode<synchronous>, transform_indices = @transform_0, window_bounds = array<i64: 16, 32>}, {pipeline_mode = #tpu.pipeline_mode<synchronous>, transform_indices = @transform_1, window_bounds = array<i64: 2, 32>}, {pipeline_mode = #tpu.pipeline_mode<synchronous>, transform_indices = @transform_2, window_bounds = array<i64: 32, 64>}, {pipeline_mode = #tpu.pipeline_mode<synchronous>, transform_indices = @transform_3, window_bounds = array<i64: 32, 64>}, {pipeline_mode = #tpu.pipeline_mode<synchronous>, transform_indices = @transform_4, window_bounds = array<i64: 1, 64>}, {pipeline_mode = #tpu.pipeline_mode<synchronous>, transform_indices = @transform_5, window_bounds = array<i64: 32, 64>}, {pipeline_mode = #tpu.pipeline_mode<synchronous>, transform_indices = @transform_6, window_bounds = array<i64: 64, 64>}, {pipeline_mode = #tpu.pipeline_mode<synchronous>, transform_indices = @transform_7, window_bounds = array<i64: 1, 64>}, {pipeline_mode = #tpu.pipeline_mode<synchronous>, transform_indices = @transform_8, window_bounds = array<i64: 64, 64>}, {pipeline_mode = #tpu.pipeline_mode<synchronous>, transform_indices = @transform_9, window_bounds = array<i64: 1, 64>}, {pipeline_mode = #tpu.pipeline_mode<synchronous>, transform_indices = @transform_10, window_bounds = array<i64: 64, 64>}, {pipeline_mode = #tpu.pipeline_mode<synchronous>, transform_indices = @transform_11, window_bounds = array<i64: 1, 64>}, {pipeline_mode = #tpu.pipeline_mode<synchronous>, transform_indices = @transform_12, window_bounds = array<i64: 64, 8>}, {pipeline_mode = #tpu.pipeline_mode<synchronous>, transform_indices = @transform_13, window_bounds = array<i64: 1, 8>}, {pipeline_mode = #tpu.pipeline_mode<synchronous>, transform_indices = @transform_14, window_bounds = array<i64: 2, 8>}]} {
    %c0 = arith.constant 0 : index
    %c0_0 = arith.constant 0 : index
    %0 = vector.load %arg1[%c0, %c0_0] : memref<16x32xf32, #tpu.memory_space<vmem>>, vector<16x32xf32>
    %c0_1 = arith.constant 0 : index
    %c0_2 = arith.constant 0 : index
    %1 = vector.load %arg2[%c0_1, %c0_2] : memref<2x32xf32, #tpu.memory_space<vmem>>, vector<2x32xf32>
    %c0_3 = arith.constant 0 : index
    %c0_4 = arith.constant 0 : index
    %2 = vector.load %arg3[%c0_3, %c0_4] : memref<32x64xf32, #tpu.memory_space<vmem>>, vector<32x64xf32>
    %c0_5 = arith.constant 0 : index
    %c0_6 = arith.constant 0 : index
    %3 = vector.load %arg4[%c0_5, %c0_6] : memref<32x64xf32, #tpu.memory_space<vmem>>, vector<32x64xf32>
    %c0_7 = arith.constant 0 : index
    %c0_8 = arith.constant 0 : index
    %4 = vector.load %arg5[%c0_7, %c0_8] : memref<1x64xf32, #tpu.memory_space<vmem>>, vector<1x64xf32>
    %cst = arith.constant dense<0.000000e+00> : vector<16x64xf32>
    %5 = tpu.matmul %0, %2, %cst {dimension_numbers = #tpu.dot_dimension_numbers<[1], [0], [0], [1], [0, 0, 1, 1], [], []>} : vector<16x32xf32>, vector<32x64xf32>, vector<16x64xf32> -> vector<16x64xf32>
    %cst_9 = arith.constant dense<0.000000e+00> : vector<16x64xf32>
    %6 = tpu.matmul %0, %3, %cst_9 {dimension_numbers = #tpu.dot_dimension_numbers<[1], [0], [0], [1], [0, 0, 1, 1], [], []>} : vector<16x32xf32>, vector<32x64xf32>, vector<16x64xf32> -> vector<16x64xf32>
    %7 = vector.shape_cast %4 : vector<1x64xf32> to vector<1x64xf32>
    %8 = vector.broadcast %7 : vector<1x64xf32> to vector<2x64xf32>
    %c0_10 = arith.constant 0 : index
    %c0_11 = arith.constant 0 : index
    %9 = vector.load %arg6[%c0_10, %c0_11] : memref<32x64xf32, #tpu.memory_space<vmem>>, vector<32x64xf32>
    %cst_12 = arith.constant dense<0.000000e+00> : vector<2x64xf32>
    %10 = tpu.matmul %1, %9, %cst_12 {dimension_numbers = #tpu.dot_dimension_numbers<[1], [0], [0], [1], [0, 0, 1, 1], [], []>} : vector<2x32xf32>, vector<32x64xf32>, vector<2x64xf32> -> vector<2x64xf32>
    %11 = arith.addf %8, %10 : vector<2x64xf32>
    %12 = vector.shape_cast %5 : vector<16x64xf32> to vector<2x8x64xf32>
    %13 = vector.shape_cast %11 : vector<2x64xf32> to vector<2x1x64xf32>
    %14 = vector.shape_cast %13 : vector<2x1x64xf32> to vector<2x1x64xf32>
    %15 = vector.broadcast %14 : vector<2x1x64xf32> to vector<2x8x64xf32>
    %16 = arith.addf %12, %15 : vector<2x8x64xf32>
    %17 = vector.shape_cast %16 : vector<2x8x64xf32> to vector<2x1x8x64xf32>
    %18 = vector.shape_cast %17 : vector<2x1x8x64xf32> to vector<2x1x8x64xf32>
    %19 = vector.broadcast %18 : vector<2x1x8x64xf32> to vector<2x8x8x64xf32>
    %20 = vector.shape_cast %6 : vector<16x64xf32> to vector<2x8x1x64xf32>
    %21 = vector.shape_cast %20 : vector<2x8x1x64xf32> to vector<2x8x1x64xf32>
    %22 = vector.broadcast %21 : vector<2x8x1x64xf32> to vector<2x8x8x64xf32>
    %23 = arith.addf %19, %22 : vector<2x8x8x64xf32>
    %cst_13 = arith.constant 0.000000e+00 : f32
    %24 = vector.broadcast %cst_13 : f32 to vector<2x8x8x64xf32>
    %25 = arith.maximumf %23, %24 : vector<2x8x8x64xf32>
    %26 = vector.shape_cast %25 : vector<2x8x8x64xf32> to vector<128x64xf32>
    %c0_14 = arith.constant 0 : index
    %c0_15 = arith.constant 0 : index
    %27 = vector.load %arg7[%c0_14, %c0_15] : memref<64x64xf32, #tpu.memory_space<vmem>>, vector<64x64xf32>
    %c0_16 = arith.constant 0 : index
    %c0_17 = arith.constant 0 : index
    %28 = vector.load %arg8[%c0_16, %c0_17] : memref<1x64xf32, #tpu.memory_space<vmem>>, vector<1x64xf32>
    %cst_18 = arith.constant dense<0.000000e+00> : vector<128x64xf32>
    %29 = tpu.matmul %26, %27, %cst_18 {dimension_numbers = #tpu.dot_dimension_numbers<[1], [0], [0], [1], [0, 0, 1, 1], [], []>} : vector<128x64xf32>, vector<64x64xf32>, vector<128x64xf32> -> vector<128x64xf32>
    %30 = vector.broadcast %28 : vector<1x64xf32> to vector<128x64xf32>
    %31 = arith.addf %29, %30 : vector<128x64xf32>
    %cst_19 = arith.constant 0.000000e+00 : f32
    %32 = vector.broadcast %cst_19 : f32 to vector<128x64xf32>
    %33 = arith.maximumf %31, %32 : vector<128x64xf32>
    %34 = vector.shape_cast %33 : vector<128x64xf32> to vector<2x64x64xf32>
    %cst_20 = arith.constant dense<0.000000e+00> : vector<2x64xf32>
    %35 = vector.multi_reduction <add>, %34, %cst_20 [1] : vector<2x64x64xf32> to vector<2x64xf32>
    %c0_21 = arith.constant 0 : index
    %c0_22 = arith.constant 0 : index
    %36 = vector.load %arg9[%c0_21, %c0_22] : memref<64x64xf32, #tpu.memory_space<vmem>>, vector<64x64xf32>
    %c0_23 = arith.constant 0 : index
    %c0_24 = arith.constant 0 : index
    %37 = vector.load %arg10[%c0_23, %c0_24] : memref<1x64xf32, #tpu.memory_space<vmem>>, vector<1x64xf32>
    %c0_25 = arith.constant 0 : index
    %c0_26 = arith.constant 0 : index
    %38 = vector.load %arg11[%c0_25, %c0_26] : memref<64x64xf32, #tpu.memory_space<vmem>>, vector<64x64xf32>
    %c0_27 = arith.constant 0 : index
    %c0_28 = arith.constant 0 : index
    %39 = vector.load %arg12[%c0_27, %c0_28] : memref<1x64xf32, #tpu.memory_space<vmem>>, vector<1x64xf32>
    %c0_29 = arith.constant 0 : index
    %c0_30 = arith.constant 0 : index
    %40 = vector.load %arg13[%c0_29, %c0_30] : memref<64x8xf32, #tpu.memory_space<vmem>>, vector<64x8xf32>
    %c0_31 = arith.constant 0 : index
    %c0_32 = arith.constant 0 : index
    %41 = vector.load %arg14[%c0_31, %c0_32] : memref<1x8xf32, #tpu.memory_space<vmem>>, vector<1x8xf32>
    %cst_33 = arith.constant dense<0.000000e+00> : vector<2x64xf32>
    %42 = tpu.matmul %35, %36, %cst_33 {dimension_numbers = #tpu.dot_dimension_numbers<[1], [0], [0], [1], [0, 0, 1, 1], [], []>} : vector<2x64xf32>, vector<64x64xf32>, vector<2x64xf32> -> vector<2x64xf32>
    %43 = vector.broadcast %37 : vector<1x64xf32> to vector<2x64xf32>
    %44 = arith.addf %42, %43 : vector<2x64xf32>
    %cst_34 = arith.constant 0.000000e+00 : f32
    %45 = vector.broadcast %cst_34 : f32 to vector<2x64xf32>
    %46 = arith.maximumf %44, %45 : vector<2x64xf32>
    %cst_35 = arith.constant dense<0.000000e+00> : vector<2x64xf32>
    %47 = tpu.matmul %46, %38, %cst_35 {dimension_numbers = #tpu.dot_dimension_numbers<[1], [0], [0], [1], [0, 0, 1, 1], [], []>} : vector<2x64xf32>, vector<64x64xf32>, vector<2x64xf32> -> vector<2x64xf32>
    %48 = vector.broadcast %39 : vector<1x64xf32> to vector<2x64xf32>
    %49 = arith.addf %47, %48 : vector<2x64xf32>
    %cst_36 = arith.constant 0.000000e+00 : f32
    %50 = vector.broadcast %cst_36 : f32 to vector<2x64xf32>
    %51 = arith.maximumf %49, %50 : vector<2x64xf32>
    %cst_37 = arith.constant dense<0.000000e+00> : vector<2x8xf32>
    %52 = tpu.matmul %51, %40, %cst_37 {dimension_numbers = #tpu.dot_dimension_numbers<[1], [0], [0], [1], [0, 0, 1, 1], [], []>} : vector<2x64xf32>, vector<64x8xf32>, vector<2x8xf32> -> vector<2x8xf32>
    %53 = vector.broadcast %41 : vector<1x8xf32> to vector<2x8xf32>
    %54 = arith.addf %52, %53 : vector<2x8xf32>
    %cst_38 = arith.constant dense<0xFF800000> : vector<2xf32>
    %55 = vector.multi_reduction <maximumf>, %54, %cst_38 [1] : vector<2x8xf32> to vector<2xf32>
    %56 = vector.shape_cast %55 : vector<2xf32> to vector<2x1xf32>
    %57 = vector.broadcast %56 : vector<2x1xf32> to vector<2x8xf32>
    %58 = arith.subf %54, %57 : vector<2x8xf32>
    %59 = math.exp %58 : vector<2x8xf32>
    %cst_39 = arith.constant dense<0.000000e+00> : vector<2xf32>
    %60 = vector.multi_reduction <add>, %59, %cst_39 [1] : vector<2x8xf32> to vector<2xf32>
    %61 = vector.shape_cast %60 : vector<2xf32> to vector<2x1xf32>
    %62 = math.log %61 : vector<2x1xf32>
    %63 = vector.broadcast %62 : vector<2x1xf32> to vector<2x8xf32>
    %64 = arith.subf %58, %63 : vector<2x8xf32>
    %c0_40 = arith.constant 0 : index
    %c0_41 = arith.constant 0 : index
    %65 = vector.load %arg15[%c0_40, %c0_41] : memref<2x8xf32, #tpu.memory_space<vmem>>, vector<2x8xf32>
    tpu.vector_store %arg15[%c0_40, %c0_41], %64 {strides = array<i32>} : memref<2x8xf32, #tpu.memory_space<vmem>>, vector<2x8xf32>,
    return
  }
  func.func @transform_0(%arg0: i32) -> (i32, i32) {
    %c0_i32 = arith.constant 0 : i32
    %c0_i32_0 = arith.constant 0 : i32
    %c0_i32_1 = arith.constant 0 : i32
    return %c0_i32, %c0_i32_0 : i32, i32
  }
  func.func @transform_1(%arg0: i32) -> (i32, i32) {
    %c0_i32 = arith.constant 0 : i32
    %c0_i32_0 = arith.constant 0 : i32
    %c0_i32_1 = arith.constant 0 : i32
    return %c0_i32, %c0_i32_0 : i32, i32
  }
  func.func @transform_2(%arg0: i32) -> (i32, i32) {
    %c0_i32 = arith.constant 0 : i32
    %c0_i32_0 = arith.constant 0 : i32
    %c0_i32_1 = arith.constant 0 : i32
    return %c0_i32, %c0_i32_0 : i32, i32
  }
  func.func @transform_3(%arg0: i32) -> (i32, i32) {
    %c0_i32 = arith.constant 0 : i32
    %c0_i32_0 = arith.constant 0 : i32
    %c0_i32_1 = arith.constant 0 : i32
    return %c0_i32, %c0_i32_0 : i32, i32
  }
  func.func @transform_4(%arg0: i32) -> (i32, i32) {
    %c0_i32 = arith.constant 0 : i32
    %c0_i32_0 = arith.constant 0 : i32
    %c0_i32_1 = arith.constant 0 : i32
    return %c0_i32, %c0_i32_0 : i32, i32
  }
  func.func @transform_5(%arg0: i32) -> (i32, i32) {
    %c0_i32 = arith.constant 0 : i32
    %c0_i32_0 = arith.constant 0 : i32
    %c0_i32_1 = arith.constant 0 : i32
    return %c0_i32, %c0_i32_0 : i32, i32
  }
  func.func @transform_6(%arg0: i32) -> (i32, i32) {
    %c0_i32 = arith.constant 0 : i32
    %c0_i32_0 = arith.constant 0 : i32
    %c0_i32_1 = arith.constant 0 : i32
    return %c0_i32, %c0_i32_0 : i32, i32
  }
  func.func @transform_7(%arg0: i32) -> (i32, i32) {
    %c0_i32 = arith.constant 0 : i32
    %c0_i32_0 = arith.constant 0 : i32
    %c0_i32_1 = arith.constant 0 : i32
    return %c0_i32, %c0_i32_0 : i32, i32
  }
  func.func @transform_8(%arg0: i32) -> (i32, i32) {
    %c0_i32 = arith.constant 0 : i32
    %c0_i32_0 = arith.constant 0 : i32
    %c0_i32_1 = arith.constant 0 : i32
    return %c0_i32, %c0_i32_0 : i32, i32
  }
  func.func @transform_9(%arg0: i32) -> (i32, i32) {
    %c0_i32 = arith.constant 0 : i32
    %c0_i32_0 = arith.constant 0 : i32
    %c0_i32_1 = arith.constant 0 : i32
    return %c0_i32, %c0_i32_0 : i32, i32
  }
  func.func @transform_10(%arg0: i32) -> (i32, i32) {
    %c0_i32 = arith.constant 0 : i32
    %c0_i32_0 = arith.constant 0 : i32
    %c0_i32_1 = arith.constant 0 : i32
    return %c0_i32, %c0_i32_0 : i32, i32
  }
  func.func @transform_11(%arg0: i32) -> (i32, i32) {
    %c0_i32 = arith.constant 0 : i32
    %c0_i32_0 = arith.constant 0 : i32
    %c0_i32_1 = arith.constant 0 : i32
    return %c0_i32, %c0_i32_0 : i32, i32
  }
  func.func @transform_12(%arg0: i32) -> (i32, i32) {
    %c0_i32 = arith.constant 0 : i32
    %c0_i32_0 = arith.constant 0 : i32
    %c0_i32_1 = arith.constant 0 : i32
    return %c0_i32, %c0_i32_0 : i32, i32
  }
  func.func @transform_13(%arg0: i32) -> (i32, i32) {
    %c0_i32 = arith.constant 0 : i32
    %c0_i32_0 = arith.constant 0 : i32
    %c0_i32_1 = arith.constant 0 : i32
    return %c0_i32, %c0_i32_0 : i32, i32
  }
  func.func @transform_14(%arg0: i32) -> (i32, i32) {
    %c0_i32 = arith.constant 0 : i32
    %c0_i32_0 = arith.constant 0 : i32
    %c0_i32_1 = arith.constant 0 : i32
    return %c0_i32, %c0_i32_0 : i32, i32
  }
}

</mosaic_0001>

<bundles_post_ra>
// kernel: tpu_custom_call.1
= control target key start
LH: loop header
LB: loop body
LE: loop exit
PB: predicated region body
PF: predicated region fallthrough
CT: control target
= control target key end

     0   :  { %19 = vsyncpa [#allocation3], 0  ;;  %s1983_s0 = inlined_call_operand.vmem [shape: f32[16,32], index: 0, kind: input, shape index: {}]   ;;  %s1984_s1 = inlined_call_operand.vmem [shape: f32[2,32], index: 1, kind: input, shape index: {}]   ;;  %s1985_s2 = inlined_call_operand.hbm [shape: f32[32,64], index: 2, kind: input, shape index: {}]   ;;  %s1986_s3 = inlined_call_operand.hbm [shape: f32[32,64], index: 3, kind: input, shape index: {}]   ;;  %s1987_s4 = inlined_call_operand.vmem [shape: f32[1,64], index: 4, kind: input, shape index: {}]   ;;  %s1988_s5 = inlined_call_operand.hbm [shape: f32[32,64], index: 5, kind: input, shape index: {}]   ;;  %s1989_s6 = inlined_call_operand.vmem [shape: f32[64,64], index: 6, kind: input, shape index: {}]   ;;  %s1990_s7 = inlined_call_operand.vmem [shape: f32[1,64], index: 7, kind: input, shape index: {}]   ;;  %s1991_s8 = inlined_call_operand.hbm [shape: f32[64,64], index: 8, kind: input, shape index: {}]   ;;  %s1992_s9 = inlined_call_operand.vmem [shape: f32[1,64], index: 9, kind: input, shape index: {}]   ;;  %s1993_s10 = inlined_call_operand.hbm [shape: f32[64,64], index: 10, kind: input, shape index: {}]   ;;  %s1994_s11 = inlined_call_operand.vmem [shape: f32[1,64], index: 11, kind: input, shape index: {}]   ;;  %s1995_s12 = inlined_call_operand.vmem [shape: f32[64,8], index: 12, kind: input, shape index: {}]   ;;  %s1996_s13 = inlined_call_operand.vmem [shape: f32[1,8], index: 13, kind: input, shape index: {}]   ;;  %s1997_s14 = inlined_call_operand.hbm [shape: f32[2,8], index: 14, kind: output, shape index: {}]  }
   0x1   :  { %20 = vsyncpa [#allocation6], 0 }
   0x2   :  { %21 = vsyncpa [#allocation9], 0 }
   0x3   :  { %22 = vsyncpa [#allocation4], 0  ;;  %s1640_s29 = smov [#allocation5]   ;;  %s1641_s15 = smov [#allocation8]  }
   0x4   :  { %s44_s30 = sshll.u32 %s1640_s29, 4  ;;  %s74_s16 = sshll.u32 %s1641_s15, 4  ;;  %s45_s30 = int_to_ptr.vmem [resolvable:$true] %s44_s30  ;;  %s1727_s16 = int_to_ptr.vmem [resolvable:$true] %s74_s16 }
   0x5   :  { %s1500_s19 = scalar_lea.hbm %s1986_s3, 512 }
   0x6   :  { %p1501_p0 = scmp.ne.s32.totalorder %s1986_s3, %s1500_s19  ;;  %p1504_p1 = scmp.lt.u32.totalorder %s1500_s19, %s1986_s3 }
   0x8   :  { %p1506_p2 = pnand %p1504_p1, %p1501_p0 }
   0xa   :  { %1509 = shalt.err (!%p1506_p2)
}
   0xb   :  { %s1510_s24 = scalar_lea.vmem %s45_s30, 512  ;;  %p1515_p4 = scmp.lt.s32.totalorder %s45_s30, %s45_s30 }
   0xc   :  { %p1511_p3 = scmp.ne.s32.totalorder %s45_s30, %s1510_s24  ;;  %p1516_p5 = scmp.lt.s32.totalorder %s1510_s24, %s1510_s24 }
   0xe   :  { %p1517_p6 = por %p1516_p5, %p1515_p4 }
  0x10   :  { %p1518_p7 = pnand %p1517_p6, %p1511_p3 }
  0x12   :  { %1521 = shalt.err (!%p1518_p7)
}
  0x13   :  { %s1642_s25 = smov 128   ;;  %s1643_s26 = smov 8  }
  0x14   :  { %50 = dma.hbm_to_vmem [thread:$0]  %s1986_s3, 512, %s45_s30, [#allocation6], %s1642_s25, %s1642_s25, %s1643_s26  }
  0x15   :  { %s1522_s17 = scalar_lea.hbm %s1991_s8, 1024 }
  0x16   :  { %p1523_p8 = scmp.ne.s32.totalorder %s1991_s8, %s1522_s17  ;;  %p1526_p9 = scmp.lt.u32.totalorder %s1522_s17, %s1991_s8 }
  0x18   :  { %p1528_p10 = pnand %p1526_p9, %p1523_p8 }
  0x1a   :  { %1531 = shalt.err (!%p1528_p10)
}
  0x1b   :  { %s1532_s22 = scalar_lea.vmem %s1727_s16, 1024  ;;  %p1537_p12 = scmp.lt.s32.totalorder %s1727_s16, %s1727_s16 }
  0x1c   :  { %p1533_p11 = scmp.ne.s32.totalorder %s1727_s16, %s1532_s22  ;;  %p1538_p13 = scmp.lt.s32.totalorder %s1532_s22, %s1532_s22 }
  0x1e   :  { %p1539_p0 = por %p1538_p13, %p1537_p12 }
  0x20   :  { %p1540_p1 = pnand %p1539_p0, %p1533_p11 }
  0x22   :  { %1543 = shalt.err (!%p1540_p1)
}
  0x23   :  { %80 = dma.hbm_to_vmem [thread:$0]  %s1991_s8, 1024, %s1727_s16, [#allocation9], %s1642_s25, %s1642_s25, %s1643_s26  }
  0x24   :  { %s1644_s23 = smov [#allocation2]   ;;  %s1645_s27 = smov [#allocation7]  }
  0x25   :  { %s32_s24 = sshll.u32 %s1644_s23, 4  ;;  %s58_s28 = sshll.u32 %s1645_s27, 4  ;;  %s33_s24 = int_to_ptr.vmem [resolvable:$true] %s32_s24  ;;  %s1764_s28 = int_to_ptr.vmem [resolvable:$true] %s58_s28 }
  0x26   :  { %s1544_s17 = scalar_lea.hbm %s1985_s2, 512 }
  0x27   :  { %p1545_p2 = scmp.ne.s32.totalorder %s1985_s2, %s1544_s17  ;;  %p1548_p3 = scmp.lt.u32.totalorder %s1544_s17, %s1985_s2 }
  0x29   :  { %p1550_p4 = pnand %p1548_p3, %p1545_p2 }
  0x2b   :  { %1553 = shalt.err (!%p1550_p4)
}
  0x2c   :  { %s1554_s8 = scalar_lea.vmem %s33_s24, 512  ;;  %p1559_p6 = scmp.lt.s32.totalorder %s33_s24, %s33_s24 }
  0x2d   :  { %p1555_p5 = scmp.ne.s32.totalorder %s33_s24, %s1554_s8  ;;  %p1560_p7 = scmp.lt.s32.totalorder %s1554_s8, %s1554_s8 }
  0x2f   :  { %p1561_p8 = por %p1560_p7, %p1559_p6 }
  0x31   :  { %p1562_p9 = pnand %p1561_p8, %p1555_p5 }
  0x33   :  { %1565 = shalt.err (!%p1562_p9)
}
  0x34   :  { %38 = dma.hbm_to_vmem [thread:$0]  %s1985_s2, 512, %s33_s24, [#allocation3], %s1642_s25, %s1642_s25, %s1643_s26  }
  0x35   :  { %s1566_s23 = scalar_lea.hbm %s1988_s5, 512 }
  0x36   :  { %p1567_p10 = scmp.ne.s32.totalorder %s1988_s5, %s1566_s23  ;;  %p1570_p11 = scmp.lt.u32.totalorder %s1566_s23, %s1988_s5 }
  0x38   :  { %p1572_p12 = pnand %p1570_p11, %p1567_p10 }
  0x3a   :  { %1575 = shalt.err (!%p1572_p12)
}
  0x3b   :  { %s1576_s18 = scalar_lea.vmem %s1764_s28, 512  ;;  %p1581_p0 = scmp.lt.s32.totalorder %s1764_s28, %s1764_s28 }
  0x3c   :  { %p1577_p13 = scmp.ne.s32.totalorder %s1764_s28, %s1576_s18  ;;  %p1582_p1 = scmp.lt.s32.totalorder %s1576_s18, %s1576_s18 }
  0x3e   :  { %p1583_p2 = por %p1582_p1, %p1581_p0 }
  0x40   :  { %p1584_p3 = pnand %p1583_p2, %p1577_p13 }
  0x42   :  { %1587 = shalt.err (!%p1584_p3)
}
  0x43   :  { %64 = dma.hbm_to_vmem [thread:$0]  %s1988_s5, 512, %s1764_s28, [#allocation6], %s1642_s25, %s1642_s25, %s1643_s26  }
  0x44   :  { %s1646_s19 = smov [#allocation10]   ;;  %s1588_s16 = scalar_lea.hbm %s1993_s10, 1024 }
  0x45   :  { %s88_s20 = sshll.u32 %s1646_s19, 4  ;;  %p1589_p4 = scmp.ne.s32.totalorder %s1993_s10, %s1588_s16  ;;  %s89_s20 = int_to_ptr.vmem [resolvable:$true] %s88_s20 }
  0x46   :  { %p1592_p5 = scmp.lt.u32.totalorder %s1588_s16, %s1993_s10 }
  0x48   :  { %p1594_p6 = pnand %p1592_p5, %p1589_p4 }
  0x4a   :  { %1597 = shalt.err (!%p1594_p6)
}
  0x4b   :  { %s1598_s27 = scalar_lea.vmem %s89_s20, 1024  ;;  %p1603_p8 = scmp.lt.s32.totalorder %s89_s20, %s89_s20 }
  0x4c   :  { %p1599_p7 = scmp.ne.s32.totalorder %s89_s20, %s1598_s27  ;;  %p1604_p9 = scmp.lt.s32.totalorder %s1598_s27, %s1598_s27 }
  0x4e   :  { %p1605_p10 = por %p1604_p9, %p1603_p8 }
  0x50   :  { %p1606_p11 = pnand %p1605_p10, %p1599_p7 }
  0x52   :  { %1609 = shalt.err (!%p1606_p11)
}
  0x53   :  { %94 = dma.hbm_to_vmem [thread:$0]  %s1993_s10, 1024, %s89_s20, [#allocation9], %s1642_s25, %s1642_s25, %s1643_s26  }
  0x54   :  { %1632 = dma.done.wait [#allocation3], 512  }
  0x55   :  { %1633 = vsyncadd [#allocation3], 4294966784 }
  0x56   :  { %1634 = dma.done.wait [#allocation6], 1024  }
  0x57   :  { %1635 = vsyncadd [#allocation6], 4294966272 }
  0x58   :  { %1636 = dma.done.wait [#allocation9], 2048  }
  0x59   :  { %1637 = vsyncadd [#allocation9], 4294965248  ;;  %v119_v0 = vld [vmem:[#allocation2] sm:$0xff]  ;;  %v120_v1 = vld [vmem:[#allocation2 + $0x8] sm:$0xff]  ;;  %vm128_vm0 = vcmask 261120   ;;  %v1647_v17 = vmov 0.0|0.0   ;;  %v373_v37 = vlaneseq }
  0x5a   :  { %v121_v2 = vld [vmem:[#allocation2 + $0x10] sm:$0xff]  ;;  %v1410_v3 = vpack.c.bf16 %v120_v1, %v119_v0  ;;  %v122_v4 = vld [vmem:[#allocation2 + $0x18] sm:$0xff]  ;;  %v123_v5 = vld [vmem:[#allocation5] sm:$0xff]  ;;  %vm1648_vm1 = vmmov 0   ;;  %v1649_v21 = vmov 0.0   ;;  %vm631_vm2 = vcmask 523264  }
  0x5b   :  { %v124_v6 = vld [vmem:[#allocation5 + $0x8] sm:$0xff]  ;;  %v1414_v7 = vpack.c.bf16 %v122_v4, %v121_v2  ;;  %v116_v9 = vld [vmem:[%s1983_s0] sm:$0xff]  ;;  %v125_v10 = vld [vmem:[#allocation5 + $0x10] sm:$0xff]  ;;  %v1650_v35 = vmov 1966171168   ;;  %v374_v39 = vshrl.u32 %v373_v37, 7 }
  0x5c   :  { %v1418_v8 = vpack.c.bf16 %v124_v6, %v123_v5  ;;  %1411 = vmatprep.subr.bf16.mxu0 %v1410_v3  ;;  %1288 = vmatprep.mubr.msk.f32.mxu0 %vm128_vm0, %v116_v9  ;;  %v126_v11 = vld [vmem:[#allocation5 + $0x18] sm:$0xff]  ;;  %v291_v13 = vld [vmem:[#allocation7] sm:$0xff]  ;;  %v292_v14 = vld [vmem:[#allocation7 + $0x8] sm:$0xff]  ;;  %v371_v36 = vunpack.c.l.s4 %v1650_v35  ;;  %vm918_vm3 = vcmask 1041409   ;;  %vm1152_vm4 = vcmask 58368  }
  0x5d   :  { %1413 = vmatpush3.bf16.msra.mxu0 %v1410_v3  ;;  %v1422_v12 = vpack.c.bf16 %v126_v11, %v125_v10  ;;  %1299 = vmatprep.mubr.msk.f32.mxu1 %vm128_vm0, %v116_v9  ;;  %v117_v15 = vld [vmem:[%s1983_s0 + $0x8] sm:$0xff]  ;;  %v1427_v16 = vpack.c.bf16 %v292_v14, %v291_v13  ;;  %v293_v18 = vld [vmem:[#allocation7 + $0x10] sm:$0xff]  ;;  %v294_v19 = vld [vmem:[#allocation7 + $0x18] sm:$0xff]  ;;  %v394_v62 = vsub.s32 0, %v374_v39 }
  0x5e   :  { %1419 = vmatprep.subr.bf16.mxu1 %v1418_v8  ;;  %1415 = vmatprep.subr.bf16.mxu0 %v1414_v7  ;;  %v1430_v20 = vpack.c.bf16 %v294_v19, %v293_v18  ;;  %v118_v22 = vld [vmem:[%s1984_s1] sm:$0x3]  ;;  %v617_v24 = vld [vmem:[%s1989_s6 + $0x8] sm:$0xff]  ;;  %v618_v26 = vld [vmem:[%s1989_s6 + $0x10] sm:$0xff]  ;;  %v372_v38 = vunpack.c.0.s8 %v371_v36 }
  0x5f   :  { %1421 = vmatpush3.bf16.msra.mxu1 %v1418_v8  ;;  %v616_v23 = vld [vmem:[%s1989_s6] sm:$0xff]  ;;  %v619_v27 = vld [vmem:[%s1989_s6 + $0x18] sm:$0xff]  ;;  %v621_v30 = vld [vmem:[%s1989_s6 + $0x28] sm:$0xff] }
  0x60   :  { %1423 = vmatprep.subr.bf16.mxu1 %v1422_v12  ;;  %v1432_v25 = vpack.c.bf16 %v617_v24, %v616_v23  ;;  %v1436_v28 = vpack.c.bf16 %v619_v27, %v618_v26  ;;  %v620_v29 = vld [vmem:[%s1989_s6 + $0x20] sm:$0xff]  ;;  %v622_v32 = vld [vmem:[%s1989_s6 + $0x30] sm:$0xff]  ;;  %v623_v33 = vld [vmem:[%s1989_s6 + $0x38] sm:$0xff]  ;;  %v375_v41 = vsub.s32 %v372_v38, %v374_v39 }
  0x61   :  { %1417 = vmatpush3.bf16.msra.mxu0 %v1414_v7  ;;  %v1440_v31 = vpack.c.bf16 %v621_v30, %v620_v29  ;;  %v1444_v34 = vpack.c.bf16 %v623_v33, %v622_v32  ;;  %v1187_v57 = vld [vmem:[%s1987_s4] ss:$0 sm:$0xff] }
  0x62   :  { %1426 = vmatprep.subr.bf16.mxu0 %v1647_v17 }
  0x63   :  { %1425 = vmatpush3.bf16.msra.mxu1 %v1422_v12 }
  0x64   :  { %1289 = vmatmul.mubr.msk.f32.vlgmr.msra.gmra.mrb[0].mxu0 %vm128_vm0, %v117_v15  ;;  %1433 = vmatprep.subr.bf16.mxu1 %v1432_v25 }
  0x65   :  { %1428 = vmatpush3.bf16.msra.mxu0 %v1427_v16  ;;  %1310 = vmatprep.mubr.msk.f32.mxu0 %vm1648_vm1, %v1649_v21 }
  0x66   :  { %1300 = vmatmul.mubr.msk.f32.vlgmr.msra.gmra.mrb[0].mxu1 %vm128_vm0, %v117_v15  ;;  %1429 = vmatprep.subr.bf16.mxu0 %v1647_v17 }
  0x67   :  { %1435 = vmatpush3.bf16.msra.mxu1 %v1432_v25 }
  0x68   :  { %1437 = vmatprep.subr.bf16.mxu1 %v1436_v28 }
  0x69   :  { %1431 = vmatpush3.bf16.msra.mxu0 %v1430_v20 }
  0x6a   :  { %1448 = vmatprep.subr.bf16.mxu0 %v1647_v17 }
  0x6b   :  { %1439 = vmatpush3.bf16.msra.mxu1 %v1436_v28 }
  0x6c   :  { %1311 = vmatmul.mubr.msk.f32.vlgmr.msra.gmra.mrb[2].mxu0 %vm128_vm0, %v118_v22  ;;  %1441 = vmatprep.subr.bf16.mxu1 %v1440_v31 }
  0x6d   :  { %1369 = vmatprep.mubr.msk.f32.mxu0 %vm1648_vm1, %v1649_v21 }
  0x6f   :  { %1443 = vmatpush3.bf16.msra.mxu1 %v1440_v31 }
  0x70   :  { %1445 = vmatprep.subr.bf16.mxu1 %v1444_v34 }
  0x73   :  { %1447 = vmatpush3.bf16.msra.mxu1 %v1444_v34 }
  0x74   :  { %1472 = vmatprep.subr.bf16.mxu1 %v1647_v17 }
 0x137   :  { %v1290_v40 = vpop.f32.mrb[0].mxu0 }
 0x138   :  { %v201_v42 = vpop.f32.mrb[1].mxu0 }
 0x139   :  { %v1301_v43 = vpop.f32.mrb[0].mxu1 }
 0x13a   :  { %v455_v44 = vcombine.high %v1301_v43, %v1301_v43  ;;  %v276_v45 = vpop.f32.mrb[1].mxu1  ;;  %v462_v49 = vrot.slane %v1301_v43, %v375_v41 }
 0x13b   :  { %v406_v46 = vcombine.high %v276_v45, %v276_v45  ;;  %v413_v47 = vrot.slane %v276_v45, %v375_v41 }
 0x13c   :  { %v469_v50 = vrot.slane %v455_v44, %v375_v41  ;;  %v470_v55 = vcombine.high %v462_v49, %v462_v49  ;;  %v478_v59 = vrot.slane %v462_v49, %v375_v41 }
 0x13d   :  { %v420_v48 = vrot.slane %v406_v46, %v375_v41  ;;  %v421_v51 = vcombine.high %v413_v47, %v413_v47  ;;  %v429_v58 = vrot.slane %v413_v47, %v375_v41 }
 0x13e   :  { %v471_v56 = vcombine.high %v469_v50, %v469_v50  ;;  %v485_v1 = vrot.slane %v469_v50, %v375_v41  ;;  %v492_v2 = vrot.slane %v470_v55, %v375_v41  ;;  %v500_v6 = vcombine.high %v478_v59, %v478_v59 }
 0x13f   :  { %v364_v52 = vpop.f32.mrb[2].mxu0  ;;  %v422_v53 = vcombine.high %v420_v48, %v420_v48  ;;  %v436_v60 = vrot.slane %v420_v48, %v375_v41  ;;  %v443_v61 = vrot.slane %v421_v51, %v375_v41  ;;  %v451_v4 = vcombine.high %v429_v58, %v429_v58 }
 0x140   :  { %v1312_v54 = vpop.f32.mrb[3].mxu0  ;;  %v368_v0 = vadd.f32 %v1187_v57, %v364_v52  ;;  %v499_v3 = vrot.slane %v471_v56, %v375_v41  ;;  %v539_v9 = vrot.slane %v478_v59, %v394_v62  ;;  %v501_v13 = vcombine.high %v485_v1, %v485_v1 }
 0x141   :  { %v450_v63 = vrot.slane %v422_v53, %v375_v41  ;;  %v452_v7 = vcombine.high %v436_v60, %v436_v60  ;;  %v453_v8 = vcombine.high %v443_v61, %v443_v61  ;;  %v502_v14 = vcombine.high %v492_v2, %v492_v2 }
 0x142   :  { %v376_v5 = vrot.slane %v368_v0, %v375_v41  ;;  %v503_v15 = vcombine.high %v499_v3, %v499_v3  ;;  %v543_v16 = vrot.slane %v492_v2, %v394_v62  ;;  %v511_v18 = vrot.slane %v443_v61, %v394_v62 }
 0x143   :  { %v454_v10 = vcombine.high %v450_v63, %v450_v63  ;;  %v515_v19 = vrot.slane %v451_v4, %v394_v62  ;;  %v519_v23 = vrot.slane %v453_v8, %v394_v62  ;;  %v523_v24 = vrot.slane %v436_v60, %v394_v62 }
 0x144   :  { %v377_v11 = vcombine.high %v376_v5, %v376_v5  ;;  %v384_v12 = vrot.slane %v376_v5, %v375_v41  ;;  %v527_v25 = vrot.slane %v450_v63, %v394_v62  ;;  %v531_v26 = vrot.slane %v452_v7, %v394_v62  ;;  %v884_v7 = vld [vmem:[#allocation8 + $0x8] sm:$0xff] }
 0x145   :  { %v507_v27 = vrot.slane %v429_v58, %v394_v62  ;;  %v535_v30 = vrot.slane %v454_v10, %v394_v62  ;;  %v547_v31 = vrot.slane %v500_v6, %v394_v62  ;;  %v551_v32 = vrot.slane %v502_v14, %v394_v62  ;;  %v883_v6 = vld [vmem:[#allocation8] sm:$0xff]  ;;  %v886_v10 = vld [vmem:[#allocation8 + $0x18] sm:$0xff] }
 0x146   :  { %v391_v20 = vrot.slane %v377_v11, %v375_v41  ;;  %v395_v22 = vrot.slane %v384_v12, %v394_v62  ;;  %v559_v33 = vrot.slane %v499_v3, %v394_v62  ;;  %v563_v34 = vrot.slane %v501_v13, %v394_v62  ;;  %v887_v12 = vld [vmem:[#allocation8 + $0x20] sm:$0xff]  ;;  %v888_v13 = vld [vmem:[#allocation8 + $0x28] sm:$0xff] }
 0x147   :  { %v567_v48 = vrot.slane %v503_v15, %v394_v62  ;;  %v555_v49 = vrot.slane %v485_v1, %v394_v62  ;;  %v1449_v8 = vpack.c.bf16 %v884_v7, %v883_v6  ;;  %v1455_v14 = vpack.c.bf16 %v888_v13, %v887_v12  ;;  %v889_v15 = vld [vmem:[#allocation8 + $0x30] sm:$0xff] }
 0x148   :  { %v399_v28 = vrot.slane %v391_v20, %v394_v62  ;;  %v402_v29 = vadd.f32 %v395_v22, %v201_v42 }
 0x149   :  { %1450 = vmatpush3.bf16.msra.mxu0 %v1449_v8 }
 0x14a   :  { %v403_v35 = vadd.f32 %v1290_v40, %v399_v28  ;;  %v584_v36 = vadd.f32 %v507_v27, %v402_v29  ;;  %v585_v37 = vadd.f32 %v511_v18, %v402_v29  ;;  %v586_v38 = vadd.f32 %v515_v19, %v402_v29  ;;  %1451 = vmatprep.subr.bf16.mxu0 %v1647_v17  ;;  %v1890_v19 = vld [vmem:[%s1990_s7] ss:$0 sm:$0xff] }
 0x14b   :  { %v587_v39 = vadd.f32 %v519_v23, %v402_v29  ;;  %v588_v43 = vadd.f32 %v523_v24, %v402_v29  ;;  %v589_v41 = vadd.f32 %v527_v25, %v402_v29  ;;  %v590_v44 = vadd.f32 %v531_v26, %v402_v29 }
 0x14c   :  { %v600_v45 = vmax.f32 %v584_v36, 0.0  ;;  %v601_v46 = vmax.f32 %v585_v37, 0.0  ;;  %v591_v47 = vadd.f32 %v535_v30, %v402_v29  ;;  %v602_v42 = vmax.f32 %v586_v38, 0.0 }
 0x14d   :  { %v592_v50 = vadd.f32 %v539_v9, %v403_v35  ;;  %v593_v51 = vadd.f32 %v543_v16, %v403_v35  ;;  %v594_v52 = vadd.f32 %v547_v31, %v403_v35  ;;  %v595_v40 = vadd.f32 %v551_v32, %v403_v35  ;;  %v885_v9 = vld [vmem:[#allocation8 + $0x10] sm:$0xff]  ;;  %v890_v16 = vld [vmem:[#allocation8 + $0x38] sm:$0xff] }
 0x14e   :  { %1329 = vmatprep.mubr.msk.f32.mxu1 %vm631_vm2, %v600_v45  ;;  %v596_v53 = vadd.f32 %v555_v49, %v403_v35  ;;  %v597_v54 = vadd.f32 %v559_v33, %v403_v35  ;;  %v598_v55 = vadd.f32 %v563_v34, %v403_v35  ;;  %v599_v56 = vadd.f32 %v567_v48, %v403_v35 }
 0x14f   :  { %1330 = vmatmul.mubr.msk.f32.vlgmr.msra.gmra.mrb[2].mxu1 %vm631_vm2, %v601_v46  ;;  %v603_v57 = vmax.f32 %v587_v39, 0.0  ;;  %v604_v58 = vmax.f32 %v588_v43, 0.0  ;;  %v605_v59 = vmax.f32 %v589_v41, 0.0  ;;  %v606_v60 = vmax.f32 %v590_v44, 0.0 }
 0x150   :  { %1332 = vmatprep.mubr.msk.f32.mxu1 %vm631_vm2, %v602_v42  ;;  %v607_v61 = vmax.f32 %v591_v47, 0.0  ;;  %v608_v62 = vmax.f32 %v592_v50, 0.0  ;;  %v609_v63 = vmax.f32 %v593_v51, 0.0  ;;  %v610_v0 = vmax.f32 %v594_v52, 0.0 }
 0x151   :  { %v611_v1 = vmax.f32 %v595_v40, 0.0  ;;  %v612_v2 = vmax.f32 %v596_v53, 0.0  ;;  %v613_v3 = vmax.f32 %v597_v54, 0.0  ;;  %v614_v4 = vmax.f32 %v598_v55, 0.0 }
 0x152   :  { %v615_v5 = vmax.f32 %v599_v56, 0.0  ;;  %v1452_v11 = vpack.c.bf16 %v886_v10, %v885_v9  ;;  %v1458_v18 = vpack.c.bf16 %v890_v16, %v889_v15 }
 0x153   :  { %1333 = vmatmul.mubr.msk.f32.gmra.mrb[4].mxu1 %vm631_vm2, %v603_v57 }
 0x154   :  { %1335 = vmatprep.mubr.msk.f32.mxu1 %vm631_vm2, %v604_v58  ;;  %1453 = vmatpush3.bf16.msra.mxu0 %v1452_v11 }
 0x155   :  { %1454 = vmatprep.subr.bf16.mxu0 %v1647_v17 }
 0x157   :  { %1336 = vmatmul.mubr.msk.f32.gmra.mrb[6].mxu1 %vm631_vm2, %v605_v59 }
 0x158   :  { %1338 = vmatprep.mubr.msk.f32.mxu1 %vm631_vm2, %v606_v60  ;;  %1456 = vmatpush3.bf16.msra.mxu0 %v1455_v14 }
 0x159   :  { %1457 = vmatprep.subr.bf16.mxu0 %v1647_v17 }
 0x15b   :  { %1339 = vmatmul.mubr.msk.f32.gmra.mrb[8].mxu1 %vm631_vm2, %v607_v61 }
 0x15c   :  { %1341 = vmatprep.mubr.msk.f32.mxu1 %vm631_vm2, %v608_v62  ;;  %1459 = vmatpush3.bf16.msra.mxu0 %v1458_v18 }
 0x15d   :  { %1460 = vmatprep.subr.bf16.mxu0 %v1647_v17 }
 0x15f   :  { %1342 = vmatmul.mubr.msk.f32.gmra.mrb[10].mxu1 %vm631_vm2, %v609_v63 }
 0x160   :  { %1344 = vmatprep.mubr.msk.f32.mxu1 %vm631_vm2, %v610_v0 }
 0x163   :  { %1345 = vmatmul.mubr.msk.f32.gmra.mrb[12].mxu1 %vm631_vm2, %v611_v1 }
 0x164   :  { %1347 = vmatprep.mubr.msk.f32.mxu1 %vm631_vm2, %v612_v2 }
 0x167   :  { %1348 = vmatmul.mubr.msk.f32.gmra.mrb[14].mxu1 %vm631_vm2, %v613_v3 }
 0x168   :  { %1350 = vmatprep.mubr.msk.f32.mxu1 %vm631_vm2, %v614_v4 }
 0x16b   :  { %1351 = vmatmul.mubr.msk.f32.gmra.mrb[16].mxu1 %vm631_vm2, %v615_v5 }
 0x16c   :  { %1407 = vmatprep.mubr.msk.f32.mxu1 %vm1648_vm1, %v1649_v21 }
 0x222   :  { %v1331_v20 = vpop.f32.mrb[2].mxu1 }
 0x223   :  { %v752_v22 = vadd.f32 %v1331_v20, %v1890_v19  ;;  %v746_v23 = vpop.f32.mrb[3].mxu1 }
 0x224   :  { %v747_v24 = vadd.f32 %v1890_v19, %v746_v23 }
 0x225   :  { %v826_v25 = vmax.f32 %v752_v22, 0.0 }
 0x226   :  { %v825_v26 = vmax.f32 %v747_v24, 0.0  ;;  %v1334_v27 = vpop.f32.mrb[4].mxu1 }
 0x227   :  { %v842_v28 = vsel %vm631_vm2, %v826_v25, 0.0  ;;  %v762_v29 = vadd.f32 %v1334_v27, %v1890_v19  ;;  %v756_v30 = vpop.f32.mrb[5].mxu1 }
 0x228   :  { %v841_v31 = vsel %vm631_vm2, %v825_v26, 0.0  ;;  %v757_v32 = vadd.f32 %v1890_v19, %v756_v30 }
 0x229   :  { %v843_v33 = vadd.f32 %v842_v28, %v841_v31  ;;  %v828_v34 = vmax.f32 %v762_v29, 0.0 }
 0x22a   :  { %v827_v35 = vmax.f32 %v757_v32, 0.0  ;;  %v1337_v36 = vpop.f32.mrb[6].mxu1 }
 0x22b   :  { %v772_v37 = vadd.f32 %v1337_v36, %v1890_v19  ;;  %v766_v38 = vpop.f32.mrb[7].mxu1  ;;  %v846_v44 = vsel %vm631_vm2, %v828_v34, 0.0 }
 0x22c   :  { %v844_v39 = vsel %vm631_vm2, %v827_v35, 0.0  ;;  %v767_v43 = vadd.f32 %v1890_v19, %v766_v38 }
 0x22d   :  { %v845_v41 = vadd.f32 %v844_v39, %v843_v33  ;;  %v830_v45 = vmax.f32 %v772_v37, 0.0 }
 0x22e   :  { %v829_v46 = vmax.f32 %v767_v43, 0.0  ;;  %v1340_v47 = vpop.f32.mrb[8].mxu1 }
 0x22f   :  { %v847_v48 = vadd.f32 %v846_v44, %v845_v41  ;;  %v782_v49 = vadd.f32 %v1340_v47, %v1890_v19  ;;  %v776_v42 = vpop.f32.mrb[9].mxu1  ;;  %v850_v40 = vsel %vm631_vm2, %v830_v45, 0.0 }
 0x230   :  { %v848_v50 = vsel %vm631_vm2, %v829_v46, 0.0  ;;  %v777_v51 = vadd.f32 %v1890_v19, %v776_v42 }
 0x231   :  { %v849_v52 = vadd.f32 %v848_v50, %v847_v48  ;;  %v832_v53 = vmax.f32 %v782_v49, 0.0  ;;  %v892_v48 = vld [vmem:[#allocation10] sm:$0xff]  ;;  %v893_v49 = vld [vmem:[#allocation10 + $0x8] sm:$0xff] }
 0x232   :  { %v831_v54 = vmax.f32 %v777_v51, 0.0  ;;  %v1343_v55 = vpop.f32.mrb[10].mxu1 }
 0x233   :  { %v851_v56 = vadd.f32 %v850_v40, %v849_v52  ;;  %v792_v57 = vadd.f32 %v1343_v55, %v1890_v19  ;;  %v786_v58 = vpop.f32.mrb[11].mxu1  ;;  %v854_v63 = vsel %vm631_vm2, %v832_v53, 0.0  ;;  %v1461_v52 = vpack.c.bf16 %v893_v49, %v892_v48  ;;  %v894_v40 = vld [vmem:[#allocation10 + $0x10] sm:$0xff]  ;;  %v895_v53 = vld [vmem:[#allocation10 + $0x18] sm:$0xff] }
 0x234   :  { %v852_v59 = vsel %vm631_vm2, %v831_v54, 0.0  ;;  %v787_v60 = vadd.f32 %v1890_v19, %v786_v58  ;;  %v1464_v55 = vpack.c.bf16 %v895_v53, %v894_v40 }
 0x235   :  { %v853_v61 = vadd.f32 %v852_v59, %v851_v56  ;;  %v834_v62 = vmax.f32 %v792_v57, 0.0  ;;  %v896_v56 = vld [vmem:[#allocation10 + $0x20] sm:$0xff]  ;;  %v897_v57 = vld [vmem:[#allocation10 + $0x28] sm:$0xff]  ;;  %v898_v59 = vld [vmem:[#allocation10 + $0x30] sm:$0xff] }
 0x236   :  { %v833_v0 = vmax.f32 %v787_v60, 0.0  ;;  %v1346_v1 = vpop.f32.mrb[12].mxu1  ;;  %v1467_v58 = vpack.c.bf16 %v897_v57, %v896_v56  ;;  %v899_v60 = vld [vmem:[#allocation10 + $0x38] sm:$0xff] }
 0x237   :  { %v855_v2 = vadd.f32 %v854_v63, %v853_v61  ;;  %v863_v3 = vsel %vm631_vm2, %v834_v62, 0.0  ;;  %v802_v4 = vadd.f32 %v1346_v1, %v1890_v19  ;;  %v796_v5 = vpop.f32.mrb[13].mxu1  ;;  %v1470_v61 = vpack.c.bf16 %v899_v60, %v898_v59  ;;  %v901_v62 = vld [vmem:[%s1995_s12] sm:$0xff]  ;;  %v903_v63 = vld [vmem:[%s1995_s12 + $0x10] sm:$0xff]  ;;  %v904_v1 = vld [vmem:[%s1995_s12 + $0x18] sm:$0xff] }
 0x238   :  { %v862_v6 = vsel %vm631_vm2, %v833_v0, 0.0  ;;  %v797_v7 = vadd.f32 %v1890_v19, %v796_v5 }
 0x239   :  { %v864_v8 = vadd.f32 %v863_v3, %v862_v6  ;;  %v836_v9 = vmax.f32 %v802_v4, 0.0  ;;  %v856_v24 = vrot.slane %v855_v2, 4  ;;  %v905_v3 = vld [vmem:[%s1995_s12 + $0x20] sm:$0xff]  ;;  %v906_v4 = vld [vmem:[%s1995_s12 + $0x28] sm:$0xff]  ;;  %v907_v6 = vld [vmem:[%s1995_s12 + $0x30] sm:$0xff] }
 0x23a   :  { %v835_v10 = vmax.f32 %v797_v7, 0.0  ;;  %v1349_v11 = vpop.f32.mrb[14].mxu1  ;;  %v1479_v5 = vpack.c.bf16 %v906_v4, %v905_v3  ;;  %v908_v7 = vld [vmem:[%s1995_s12 + $0x38] sm:$0xff] }
 0x23b   :  { %v812_v12 = vadd.f32 %v1349_v11, %v1890_v19  ;;  %v806_v13 = vpop.f32.mrb[15].mxu1  ;;  %v867_v18 = vsel %vm631_vm2, %v836_v9, 0.0  ;;  %v857_v34 = vadd.f32 %v856_v24, %v855_v2  ;;  %v1476_v2 = vpack.c.bf16 %v904_v1, %v903_v63  ;;  %v1206_v9 = vld [vmem:[%s1992_s9] ss:$0 sm:$0xff]  ;;  %s1651_s9 = smov [#allocation11]  }
 0x23c   :  { %v865_v14 = vsel %vm631_vm2, %v835_v10, 0.0  ;;  %v807_v15 = vadd.f32 %v1890_v19, %v806_v13 }
 0x23d   :  { %v866_v16 = vadd.f32 %v865_v14, %v864_v8  ;;  %v838_v20 = vmax.f32 %v812_v12, 0.0  ;;  %v858_v39 = vrot.slane %v857_v34, 2  ;;  %v1482_v8 = vpack.c.bf16 %v908_v7, %v907_v6  ;;  %v1208_v14 = vld [vmem:[%s1994_s11] ss:$0 sm:$0xff]  ;;  %s1172_s11 = sshll.u32 %s1651_s9, 4  ;;  %s1173_s11 = int_to_ptr.vmem [resolvable:$true] %s1172_s11 }
 0x23e   :  { %v837_v22 = vmax.f32 %v807_v15, 0.0  ;;  %v1352_v23 = vpop.f32.mrb[16].mxu1  ;;  %p1615_p13 = scmp.lt.s32.totalorder %s1173_s11, %s1173_s11 }
 0x23f   :  { %v868_v25 = vadd.f32 %v867_v18, %v866_v16  ;;  %v822_v26 = vadd.f32 %v1352_v23, %v1890_v19  ;;  %v816_v27 = vpop.f32.mrb[17].mxu1  ;;  %v871_v31 = vsel %vm631_vm2, %v838_v20, 0.0  ;;  %v859_v44 = vadd.f32 %v858_v39, %v857_v34 }
 0x240   :  { %v869_v28 = vsel %vm631_vm2, %v837_v22, 0.0  ;;  %v817_v29 = vadd.f32 %v1890_v19, %v816_v27 }
 0x241   :  { %v870_v30 = vadd.f32 %v869_v28, %v868_v25  ;;  %v840_v32 = vmax.f32 %v822_v26, 0.0  ;;  %v860_v47 = vrot.slane %v859_v44, 1 }
 0x242   :  { %v839_v33 = vmax.f32 %v817_v29, 0.0 }
 0x243   :  { %v872_v35 = vadd.f32 %v871_v31, %v870_v30  ;;  %v875_v38 = vsel %vm631_vm2, %v840_v32, 0.0  ;;  %v861_v50 = vadd.f32 %v860_v47, %v859_v44 }
 0x244   :  { %v873_v36 = vsel %vm631_vm2, %v839_v33, 0.0 }
 0x245   :  { %v874_v37 = vadd.f32 %v873_v36, %v872_v35 }
 0x247   :  { %v876_v43 = vadd.f32 %v875_v38, %v874_v37 }
 0x249   :  { %v877_v41 = vrot.slane %v876_v43, 4 }
 0x24b   :  { %v878_v45 = vadd.f32 %v877_v41, %v876_v43 }
 0x24d   :  { %v879_v46 = vrot.slane %v878_v45, 2 }
 0x24f   :  { %v880_v19 = vadd.f32 %v879_v46, %v878_v45 }
 0x251   :  { %v881_v42 = vrot.slane %v880_v19, 1 }
 0x253   :  { %v882_v51 = vadd.f32 %v881_v42, %v880_v19 }
 0x255   :  { %v919_v54 = vsel %vm918_vm3, %v882_v51, %v861_v50 }
 0x256   :  { %1370 = vmatmul.mubr.msk.f32.vlgmr.msra.gmra.mrb[4].mxu0 %vm631_vm2, %v919_v54 }
 0x257   :  { %1462 = vmatpush3.bf16.msra.mxu0 %v1461_v52  ;;  %1388 = vmatprep.mubr.msk.f32.mxu0 %vm1648_vm1, %v1649_v21  ;;  %v902_v21 = vld [vmem:[%s1995_s12 + $0x8] sm:$0xff] }
 0x258   :  { %1463 = vmatprep.subr.bf16.mxu0 %v1647_v17  ;;  %v1473_v0 = vpack.c.bf16 %v902_v21, %v901_v62 }
 0x25a   :  { %1474 = vmatpush3.bf16.msra.mxu1 %v1473_v0 }
 0x25b   :  { %1465 = vmatpush3.bf16.msra.mxu0 %v1464_v55  ;;  %1475 = vmatprep.subr.bf16.mxu1 %v1647_v17 }
 0x25c   :  { %1466 = vmatprep.subr.bf16.mxu0 %v1647_v17 }
 0x25e   :  { %1477 = vmatpush3.bf16.msra.mxu1 %v1476_v2 }
 0x25f   :  { %1468 = vmatpush3.bf16.msra.mxu0 %v1467_v58  ;;  %1478 = vmatprep.subr.bf16.mxu1 %v1647_v17 }
 0x260   :  { %1469 = vmatprep.subr.bf16.mxu0 %v1647_v17 }
 0x262   :  { %1480 = vmatpush3.bf16.msra.mxu1 %v1479_v5 }
 0x263   :  { %1471 = vmatpush3.bf16.msra.mxu0 %v1470_v61  ;;  %1481 = vmatprep.subr.bf16.mxu1 %v1647_v17  ;;  %v1210_v17 = vld [vmem:[%s1996_s13] ss:$0 sm:$0xff]  ;;  %s1610_s13 = scalar_lea.vmem %s1173_s11, 32 }
 0x264   :  { %p1611_p12 = scmp.ne.s32.totalorder %s1173_s11, %s1610_s13  ;;  %p1616_p0 = scmp.lt.s32.totalorder %s1610_s13, %s1610_s13 }
 0x266   :  { %1483 = vmatpush3.bf16.msra.mxu1 %v1482_v8  ;;  %p1617_p1 = por %p1616_p0, %p1615_p13 }
 0x268   :  { %p1618_p2 = pnand %p1617_p1, %p1611_p12 }
 0x329   :  { %v988_v10 = vpop.f32.mrb[4].mxu0 }
 0x32a   :  { %v989_v11 = vadd.f32 %v1206_v9, %v988_v10  ;;  %v1371_v12 = vpop.f32.mrb[5].mxu0 }
 0x32c   :  { %v992_v13 = vmax.f32 %v989_v11, 0.0 }
 0x32e   :  { %1389 = vmatmul.mubr.msk.f32.vlgmr.msra.gmra.mrb[6].mxu0 %vm631_vm2, %v992_v13 }
 0x401   :  { %v1068_v15 = vpop.f32.mrb[6].mxu0 }
 0x402   :  { %v1069_v16 = vadd.f32 %v1208_v14, %v1068_v15  ;;  %v1390_v18 = vpop.f32.mrb[7].mxu0 }
 0x404   :  { %v1072_v20 = vmax.f32 %v1069_v16, 0.0 }
 0x406   :  { %1408 = vmatmul.mubr.msk.f32.vlgmr.msra.gmra.mrb[18].mxu1 %vm631_vm2, %v1072_v20 }
 0x4d9   :  { %v1148_v22 = vpop.f32.mrb[18].mxu1 }
 0x4da   :  { %v1149_v23 = vadd.f32 %v1210_v17, %v1148_v22  ;;  %v1409_v24 = vpop.f32.mrb[19].mxu1 }
 0x4dc   :  { %v1153_v25 = vsel %vm1152_vm4, %v1149_v23, -inf }
 0x4dd   :  { %1154 = vmax.xlane.f32.xlu0 %v1153_v25 }
 0x56a   :  { %v1155_v26 = vpop.xlane.xlu0 %1154 }
 0x56b   :  { %v1156_v27 = vsub.f32 %v1149_v23, %v1155_v26 }
 0x56d   :  { %v1157_v28 = vmul.f32 1.442695, %v1156_v27 }
 0x56f   :  { %1496 = vpow2.f32 %v1157_v28 }
 0x579   :  { %v1497_v29 = vpop.eup %1496 }
 0x57a   :  { %v1159_v30 = vsel %vm1152_vm4, %v1497_v29, 0.0 }
 0x57b   :  { %1160 = vadd.xlane.f32.xlu0 %v1159_v30 }
 0x608   :  { %v1161_v31 = vpop.xlane.xlu0 %1160 }
 0x609   :  { %1498 = vlog2.f32 %v1161_v31 }
 0x613   :  { %v1499_v32 = vpop.eup %1498 }
 0x614   :  { %v1163_v33 = vmul.f32 0.6931472, %v1499_v32 }
 0x616   :  { %v1164_v34 = vsub.f32 %v1156_v27, %v1163_v33 }
 0x618   :  { %1165 = vst.msk [vmem:[#allocation11] sm:$0x3] %vm1152_vm4, %v1164_v34 }
 0x619   :  { %1621 = shalt.err (!%p1618_p2)
}
 0x61a   :  { %s1622_s28 = scalar_lea.hbm %s1997_s14, 32 }
 0x61b   :  { %p1623_p3 = scmp.ne.s32.totalorder %s1997_s14, %s1622_s28  ;;  %p1626_p4 = scmp.lt.u32.totalorder %s1622_s28, %s1997_s14 }
 0x61d   :  { %p1628_p5 = pnand %p1626_p4, %p1623_p3 }
 0x61f   :  { %1631 = shalt.err (!%p1628_p5)
}
 0x620   :  { %1175 = dma.vmem_to_hbm [thread:$0]  %s1173_s11, 32, %s1997_s14, [#allocation4]  }
 0x621   :  { %1638 = dma.done.wait [#allocation4], 32  }
 0x622   :  { %1639 = vsyncadd [#allocation4], 4294967264 }
 0x623   :  { %1179 = vsyncpa [#allocation3], 1 }
 0x624   :  { %1180 = vsyncpa [#allocation6], 1 }
 0x625   :  { %1181 = vsyncpa [#allocation9], 1 }
 0x626   :  { %1182 = vsyncpa [#allocation4], 1 }

</bundles_post_ra>
